<compile_context>
chip_gen: v7x
topology: tpu7x:2x2x1
jax: 0.10.0
libtpu: 0.0.40
codegen_flags: <defaults>
</compile_context>

<pallas_src>
import jax
import jax.numpy as jnp
from jax.experimental import pallas as pl
from jax.experimental.pallas import tpu as pltpu


# ----------------------------------------------------------------------------
# Fused attention kernel (one batch tile per grid step)
# ----------------------------------------------------------------------------
def _attention_kernel(vi_ref, vq_ref, wq_ref, bq_ref, wkv_ref, bkv_ref,
                      g_ref, b_ref, o_ref):
    tb, S, E = vi_ref.shape

    vi = vi_ref[...].astype(jnp.float32)                       # (tb, S, E)
    vq = vq_ref[...].astype(jnp.float32)                       # (tb, E)

    # Fused K/V projection: one matmul against [Wk^T | Wv^T]  ->  (tb*S, 2E)
    kv = jnp.dot(vi.reshape(tb * S, E), wkv_ref[...],
                 preferred_element_type=jnp.float32) + bkv_ref[...]
    kv = kv.reshape(tb, S, 2 * E)
    k = kv[:, :, :E]                                            # (tb, S, E)
    v = kv[:, :, E:]                                            # (tb, S, E)

    # Q projection (single query per batch row).
    q = jnp.dot(vq, wq_ref[...],
                preferred_element_type=jnp.float32) + bq_ref[...]   # (tb, E)

    # Attention scores: broadcast-multiply + lane reduce (one query per row,
    # so no M=1 matmul on the MXU).
    scale = 1.0 / (float(E) ** 0.5)
    s = jnp.sum(q[:, None, :] * k, axis=-1) * scale             # (tb, S)

    # Numerically stable softmax over S.
    m = jnp.max(s, axis=-1, keepdims=True)
    p = jnp.exp(s - m)
    w = p / jnp.sum(p, axis=-1, keepdims=True)                  # (tb, S)

    # Weighted sum of V (sublane reduce over S).
    att = jnp.sum(w[:, :, None] * v, axis=1)                    # (tb, E)

    # Residual + LayerNorm (PyTorch defaults: eps=1e-5, biased variance).
    x = att + vq
    mean = jnp.mean(x, axis=-1, keepdims=True)
    xc = x - mean
    var = jnp.mean(xc * xc, axis=-1, keepdims=True)
    inv = jax.lax.rsqrt(var + 1e-5)
    u = xc * inv * g_ref[...] + b_ref[...]
    o_ref[...] = u.astype(o_ref.dtype)


# ----------------------------------------------------------------------------
# Wrapper: batch-tiled grid, everything else resident per block
# ----------------------------------------------------------------------------
@jax.jit
def attention_forward(vi, vq, params):
    """vi: (B, S, E), vq: (B, E)  ->  (B, E)."""
    B, S, E = vi.shape

    block_b = 128                      # batch rows per grid step
    tb = B if B <= block_b else block_b
    Bp = ((B + tb - 1) // tb) * tb     # pad batch to a multiple of the tile
    if Bp != B:
        vi = jnp.pad(vi, ((0, Bp - B), (0, 0), (0, 0)))
        vq = jnp.pad(vq, ((0, Bp - B), (0, 0)))

    out = pl.pallas_call(
        _attention_kernel,
        out_shape=jax.ShapeDtypeStruct((Bp, E), vq.dtype),
        grid=(Bp // tb,),
        in_specs=[
            pl.BlockSpec((tb, S, E), lambda i: (i, 0, 0)),   # vi tile
            pl.BlockSpec((tb, E), lambda i: (i, 0)),         # vq tile
            pl.BlockSpec((E, E), lambda i: (0, 0)),          # Wq^T   (resident)
            pl.BlockSpec((1, E), lambda i: (0, 0)),          # bq
            pl.BlockSpec((E, 2 * E), lambda i: (0, 0)),      # [Wk^T | Wv^T]
            pl.BlockSpec((1, 2 * E), lambda i: (0, 0)),      # [bk | bv]
            pl.BlockSpec((1, E), lambda i: (0, 0)),          # LayerNorm gamma
            pl.BlockSpec((1, E), lambda i: (0, 0)),          # LayerNorm beta
        ],
        out_specs=pl.BlockSpec((tb, E), lambda i: (i, 0)),
        compiler_params=pltpu.CompilerParams(
            dimension_semantics=("parallel",)),
    )(vi, vq, params["wq_t"], params["bq"], params["wkv_t"], params["bkv"],
      params["gamma"], params["beta"])
    return out[:B]


# ----------------------------------------------------------------------------
# Pure-JAX reference (mirrors the PyTorch forward) for a correctness check
# ----------------------------------------------------------------------------
def reference_forward(vi, vq, params):
    E = vq.shape[-1]
    wkv = params["wkv_t"]
    bkv = params["bkv"][0]
    q = vq @ params["wq_t"] + params["bq"][0]
    k = vi @ wkv[:, :E] + bkv[:E]
    v = vi @ wkv[:, E:] + bkv[E:]
    s = jnp.einsum("be,bse->bs", q, k) / (float(E) ** 0.5)
    w = jax.nn.softmax(s, axis=-1)
    att = jnp.einsum("bs,bse->be", w, v)
    x = att + vq
    mean = x.mean(-1, keepdims=True)
    var = ((x - mean) ** 2).mean(-1, keepdims=True)
    return ((x - mean) / jnp.sqrt(var + 1e-5) * params["gamma"][0]
            + params["beta"][0])


# ----------------------------------------------------------------------------
# Deterministic parameter init (nn.Linear / nn.LayerNorm defaults)
# ----------------------------------------------------------------------------
def init_params(key, embed_size):
    ks = jax.random.split(key, 6)
    bound = 1.0 / (embed_size ** 0.5)

    def lin_w(k):  # stored transposed (in, out) so the kernel does x @ W^T
        return jax.random.uniform(k, (embed_size, embed_size), jnp.float32,
                                  -bound, bound)

    def lin_b(k):
        return jax.random.uniform(k, (1, embed_size), jnp.float32,
                                  -bound, bound)

    wq_t, bq = lin_w(ks[0]), lin_b(ks[1])
    wk_t, bk = lin_w(ks[2]), lin_b(ks[3])
    wv_t, bv = lin_w(ks[4]), lin_b(ks[5])
    return {
        "wq_t": wq_t,
        "bq": bq,
        "wkv_t": jnp.concatenate([wk_t, wv_t], axis=1),   # (E, 2E)
        "bkv": jnp.concatenate([bk, bv], axis=1),         # (1, 2E)
        "gamma": jnp.ones((1, embed_size), jnp.float32),
        "beta": jnp.zeros((1, embed_size), jnp.float32),
    }


if __name__ == "__main__":
    key = jax.random.PRNGKey(0)
    k_vi, k_vq, k_p = jax.random.split(key, 3)

    B, S, E = 2, 8, 32
    vi = jax.random.normal(k_vi, (B, S, E), jnp.float32)   # image features
    vq = jax.random.normal(k_vq, (B, E), jnp.float32)      # query vector
    params = init_params(k_p, E)

    out = jax.block_until_ready(attention_forward(vi, vq, params))
    assert out.shape == (B, E), out.shape

    ref = jax.block_until_ready(reference_forward(vi, vq, params))
    assert jnp.allclose(out, ref, rtol=5e-2, atol=5e-2), float(
        jnp.max(jnp.abs(out - ref)))

    print("KERNEL_OK")
</pallas_src>

<mosaic_0001>
module attributes {stable_mosaic.version = 11 : i64} {
  func.func @_attention_kernel(%arg0: i32, %arg1: memref<2x8x32xf32, #tpu.memory_space<vmem>>, %arg2: memref<2x32xf32, #tpu.memory_space<vmem>>, %arg3: memref<32x32xf32, #tpu.memory_space<vmem>>, %arg4: memref<1x32xf32, #tpu.memory_space<vmem>>, %arg5: memref<32x64xf32, #tpu.memory_space<vmem>>, %arg6: memref<1x64xf32, #tpu.memory_space<vmem>>, %arg7: memref<1x32xf32, #tpu.memory_space<vmem>>, %arg8: memref<1x32xf32, #tpu.memory_space<vmem>>, %arg9: memref<2x32xf32, #tpu.memory_space<vmem>>) attributes {dimension_semantics = [#tpu.dimension_semantics<parallel>], iteration_bounds = array<i64: 1>, scalar_prefetch = 0 : i64, scratch_operands = 0 : i64, tpu.core_type = #tpu.core_type<tc>, window_params = [{transform_indices = @transform_0, window_bounds = array<i64: 2, 8, 32>}, {transform_indices = @transform_1, window_bounds = array<i64: 2, 32>}, {pipeline_mode = #tpu.pipeline_mode<synchronous>, transform_indices = @transform_2, window_bounds = array<i64: 32, 32>}, {pipeline_mode = #tpu.pipeline_mode<synchronous>, transform_indices = @transform_3, window_bounds = array<i64: 1, 32>}, {pipeline_mode = #tpu.pipeline_mode<synchronous>, transform_indices = @transform_4, window_bounds = array<i64: 32, 64>}, {pipeline_mode = #tpu.pipeline_mode<synchronous>, transform_indices = @transform_5, window_bounds = array<i64: 1, 64>}, {pipeline_mode = #tpu.pipeline_mode<synchronous>, transform_indices = @transform_6, window_bounds = array<i64: 1, 32>}, {pipeline_mode = #tpu.pipeline_mode<synchronous>, transform_indices = @transform_7, window_bounds = array<i64: 1, 32>}, {transform_indices = @transform_8, window_bounds = array<i64: 2, 32>}]} {
    %c0 = arith.constant 0 : index
    %c0_0 = arith.constant 0 : index
    %c0_1 = arith.constant 0 : index
    %0 = vector.load %arg1[%c0, %c0_0, %c0_1] : memref<2x8x32xf32, #tpu.memory_space<vmem>>, vector<2x8x32xf32>
    %c0_2 = arith.constant 0 : index
    %c0_3 = arith.constant 0 : index
    %1 = vector.load %arg2[%c0_2, %c0_3] : memref<2x32xf32, #tpu.memory_space<vmem>>, vector<2x32xf32>
    %2 = vector.shape_cast %0 : vector<2x8x32xf32> to vector<16x32xf32>
    %c0_4 = arith.constant 0 : index
    %c0_5 = arith.constant 0 : index
    %3 = vector.load %arg5[%c0_4, %c0_5] : memref<32x64xf32, #tpu.memory_space<vmem>>, vector<32x64xf32>
    %cst = arith.constant dense<0.000000e+00> : vector<16x64xf32>
    %4 = tpu.matmul %2, %3, %cst {dimension_numbers = #tpu.dot_dimension_numbers<[1], [0], [0], [1], [0, 0, 1, 1], [], []>} : vector<16x32xf32>, vector<32x64xf32>, vector<16x64xf32> -> vector<16x64xf32>
    %c0_6 = arith.constant 0 : index
    %c0_7 = arith.constant 0 : index
    %5 = vector.load %arg6[%c0_6, %c0_7] : memref<1x64xf32, #tpu.memory_space<vmem>>, vector<1x64xf32>
    %6 = vector.broadcast %5 : vector<1x64xf32> to vector<16x64xf32>
    %7 = arith.addf %4, %6 : vector<16x64xf32>
    %8 = vector.shape_cast %7 : vector<16x64xf32> to vector<2x8x64xf32>
    %9 = vector.extract_strided_slice %8 {offsets = [0, 0, 0], sizes = [2, 8, 32], strides = [1, 1, 1]} : vector<2x8x64xf32> to vector<2x8x32xf32>
    %10 = vector.extract_strided_slice %8 {offsets = [0, 0, 32], sizes = [2, 8, 32], strides = [1, 1, 1]} : vector<2x8x64xf32> to vector<2x8x32xf32>
    %c0_8 = arith.constant 0 : index
    %c0_9 = arith.constant 0 : index
    %11 = vector.load %arg3[%c0_8, %c0_9] : memref<32x32xf32, #tpu.memory_space<vmem>>, vector<32x32xf32>
    %cst_10 = arith.constant dense<0.000000e+00> : vector<2x32xf32>
    %12 = tpu.matmul %1, %11, %cst_10 {dimension_numbers = #tpu.dot_dimension_numbers<[1], [0], [0], [1], [0, 0, 1, 1], [], []>} : vector<2x32xf32>, vector<32x32xf32>, vector<2x32xf32> -> vector<2x32xf32>
    %c0_11 = arith.constant 0 : index
    %c0_12 = arith.constant 0 : index
    %13 = vector.load %arg4[%c0_11, %c0_12] : memref<1x32xf32, #tpu.memory_space<vmem>>, vector<1x32xf32>
    %14 = vector.broadcast %13 : vector<1x32xf32> to vector<2x32xf32>
    %15 = arith.addf %12, %14 : vector<2x32xf32>
    %16 = vector.shape_cast %15 : vector<2x32xf32> to vector<2x1x32xf32>
    %17 = vector.broadcast %16 : vector<2x1x32xf32> to vector<2x8x32xf32>
    %18 = arith.mulf %17, %9 : vector<2x8x32xf32>
    %cst_13 = arith.constant dense<0.000000e+00> : vector<2x8xf32>
    %19 = vector.multi_reduction <add>, %18, %cst_13 [2] : vector<2x8x32xf32> to vector<2x8xf32>
    %cst_14 = arith.constant 0.176776692 : f32
    %20 = vector.broadcast %cst_14 : f32 to vector<2x8xf32>
    %21 = arith.mulf %19, %20 : vector<2x8xf32>
    %cst_15 = arith.constant dense<0xFF800000> : vector<2xf32>
    %22 = vector.multi_reduction <maximumf>, %21, %cst_15 [1] : vector<2x8xf32> to vector<2xf32>
    %23 = vector.shape_cast %22 : vector<2xf32> to vector<2x1xf32>
    %24 = vector.broadcast %23 : vector<2x1xf32> to vector<2x8xf32>
    %25 = arith.subf %21, %24 : vector<2x8xf32>
    %26 = math.exp %25 : vector<2x8xf32>
    %cst_16 = arith.constant dense<0.000000e+00> : vector<2xf32>
    %27 = vector.multi_reduction <add>, %26, %cst_16 [1] : vector<2x8xf32> to vector<2xf32>
    %28 = vector.shape_cast %27 : vector<2xf32> to vector<2x1xf32>
    %29 = vector.broadcast %28 : vector<2x1xf32> to vector<2x8xf32>
    %30 = arith.divf %26, %29 : vector<2x8xf32>
    %31 = vector.shape_cast %30 : vector<2x8xf32> to vector<2x8x1xf32>
    %32 = vector.broadcast %31 : vector<2x8x1xf32> to vector<2x8x32xf32>
    %33 = arith.mulf %32, %10 : vector<2x8x32xf32>
    %cst_17 = arith.constant dense<0.000000e+00> : vector<2x32xf32>
    %34 = vector.multi_reduction <add>, %33, %cst_17 [1] : vector<2x8x32xf32> to vector<2x32xf32>
    %35 = arith.addf %34, %1 : vector<2x32xf32>
    %cst_18 = arith.constant dense<0.000000e+00> : vector<2xf32>
    %36 = vector.multi_reduction <add>, %35, %cst_18 [1] : vector<2x32xf32> to vector<2xf32>
    %37 = vector.shape_cast %36 : vector<2xf32> to vector<2x1xf32>
    %cst_19 = arith.constant 3.200000e+01 : f32
    %38 = vector.broadcast %cst_19 : f32 to vector<2x1xf32>
    %39 = arith.divf %37, %38 : vector<2x1xf32>
    %40 = vector.broadcast %39 : vector<2x1xf32> to vector<2x32xf32>
    %41 = arith.subf %35, %40 : vector<2x32xf32>
    %42 = arith.mulf %41, %41 : vector<2x32xf32>
    %cst_20 = arith.constant dense<0.000000e+00> : vector<2xf32>
    %43 = vector.multi_reduction <add>, %42, %cst_20 [1] : vector<2x32xf32> to vector<2xf32>
    %44 = vector.shape_cast %43 : vector<2xf32> to vector<2x1xf32>
    %cst_21 = arith.constant 3.200000e+01 : f32
    %45 = vector.broadcast %cst_21 : f32 to vector<2x1xf32>
    %46 = arith.divf %44, %45 : vector<2x1xf32>
    %cst_22 = arith.constant 9.99999974E-6 : f32
    %47 = vector.broadcast %cst_22 : f32 to vector<2x1xf32>
    %48 = arith.addf %46, %47 : vector<2x1xf32>
    %49 = math.rsqrt %48 : vector<2x1xf32>
    %50 = vector.broadcast %49 : vector<2x1xf32> to vector<2x32xf32>
    %51 = arith.mulf %41, %50 : vector<2x32xf32>
    %c0_23 = arith.constant 0 : index
    %c0_24 = arith.constant 0 : index
    %52 = vector.load %arg7[%c0_23, %c0_24] : memref<1x32xf32, #tpu.memory_space<vmem>>, vector<1x32xf32>
    %53 = vector.broadcast %52 : vector<1x32xf32> to vector<2x32xf32>
    %54 = arith.mulf %51, %53 : vector<2x32xf32>
    %c0_25 = arith.constant 0 : index
    %c0_26 = arith.constant 0 : index
    %55 = vector.load %arg8[%c0_25, %c0_26] : memref<1x32xf32, #tpu.memory_space<vmem>>, vector<1x32xf32>
    %56 = vector.broadcast %55 : vector<1x32xf32> to vector<2x32xf32>
    %57 = arith.addf %54, %56 : vector<2x32xf32>
    %c0_27 = arith.constant 0 : index
    %c0_28 = arith.constant 0 : index
    %58 = vector.load %arg9[%c0_27, %c0_28] : memref<2x32xf32, #tpu.memory_space<vmem>>, vector<2x32xf32>
    tpu.vector_store %arg9[%c0_27, %c0_28], %57 {strides = array<i32>} : memref<2x32xf32, #tpu.memory_space<vmem>>, vector<2x32xf32>,
    return
  }
  func.func @transform_0(%arg0: i32) -> (i32, i32, i32) {
    %c0_i32 = arith.constant 0 : i32
    %c0_i32_0 = arith.constant 0 : i32
    %c0_i32_1 = arith.constant 0 : i32
    return %arg0, %c0_i32, %c0_i32_0 : i32, i32, i32
  }
  func.func @transform_1(%arg0: i32) -> (i32, i32) {
    %c0_i32 = arith.constant 0 : i32
    %c0_i32_0 = arith.constant 0 : i32
    return %arg0, %c0_i32 : i32, i32
  }
  func.func @transform_2(%arg0: i32) -> (i32, i32) {
    %c0_i32 = arith.constant 0 : i32
    %c0_i32_0 = arith.constant 0 : i32
    %c0_i32_1 = arith.constant 0 : i32
    return %c0_i32, %c0_i32_0 : i32, i32
  }
  func.func @transform_3(%arg0: i32) -> (i32, i32) {
    %c0_i32 = arith.constant 0 : i32
    %c0_i32_0 = arith.constant 0 : i32
    %c0_i32_1 = arith.constant 0 : i32
    return %c0_i32, %c0_i32_0 : i32, i32
  }
  func.func @transform_4(%arg0: i32) -> (i32, i32) {
    %c0_i32 = arith.constant 0 : i32
    %c0_i32_0 = arith.constant 0 : i32
    %c0_i32_1 = arith.constant 0 : i32
    return %c0_i32, %c0_i32_0 : i32, i32
  }
  func.func @transform_5(%arg0: i32) -> (i32, i32) {
    %c0_i32 = arith.constant 0 : i32
    %c0_i32_0 = arith.constant 0 : i32
    %c0_i32_1 = arith.constant 0 : i32
    return %c0_i32, %c0_i32_0 : i32, i32
  }
  func.func @transform_6(%arg0: i32) -> (i32, i32) {
    %c0_i32 = arith.constant 0 : i32
    %c0_i32_0 = arith.constant 0 : i32
    %c0_i32_1 = arith.constant 0 : i32
    return %c0_i32, %c0_i32_0 : i32, i32
  }
  func.func @transform_7(%arg0: i32) -> (i32, i32) {
    %c0_i32 = arith.constant 0 : i32
    %c0_i32_0 = arith.constant 0 : i32
    %c0_i32_1 = arith.constant 0 : i32
    return %c0_i32, %c0_i32_0 : i32, i32
  }
  func.func @transform_8(%arg0: i32) -> (i32, i32) {
    %c0_i32 = arith.constant 0 : i32
    %c0_i32_0 = arith.constant 0 : i32
    return %arg0, %c0_i32 : i32, i32
  }
}

</mosaic_0001>

<bundles_post_ra>
// kernel: attention_forward.1
= control target key start
LH: loop header
LB: loop body
LE: loop exit
PB: predicated region body
PF: predicated region fallthrough
CT: control target
= control target key end

     0   :  { %13 = vsyncpa [#allocation3], 0  ;;  %s835_s0 = inlined_call_operand.hbm [shape: f32[2,8,32], index: 0, kind: input, shape index: {}]   ;;  %s836_s1 = inlined_call_operand.vmem [shape: f32[2,32], index: 1, kind: input, shape index: {}]   ;;  %s837_s2 = inlined_call_operand.hbm [shape: f32[32,32], index: 2, kind: input, shape index: {}]   ;;  %s838_s3 = inlined_call_operand.vmem [shape: f32[1,32], index: 3, kind: input, shape index: {}]   ;;  %s839_s4 = inlined_call_operand.hbm [shape: f32[32,64], index: 4, kind: input, shape index: {}]   ;;  %s840_s5 = inlined_call_operand.vmem [shape: f32[1,64], index: 5, kind: input, shape index: {}]   ;;  %s841_s6 = inlined_call_operand.vmem [shape: f32[1,32], index: 6, kind: input, shape index: {}]   ;;  %s842_s7 = inlined_call_operand.vmem [shape: f32[1,32], index: 7, kind: input, shape index: {}]   ;;  %s843_s8 = inlined_call_operand.hbm [shape: f32[2,32], index: 8, kind: output, shape index: {}]  }
   0x1   :  { %14 = vsyncpa [#allocation6], 0 }
   0x2   :  { %15 = vsyncpa [#allocation4], 0  ;;  %s661_s27 = smov [#allocation5]   ;;  %s662_s29 = smov [#allocation2]  }
   0x3   :  { %s35_s28 = sshll.u32 %s661_s27, 4  ;;  %s21_s30 = sshll.u32 %s662_s29, 4  ;;  %s36_s28 = int_to_ptr.vmem [resolvable:$true] %s35_s28  ;;  %s719_s30 = int_to_ptr.vmem [resolvable:$true] %s21_s30 }
   0x4   :  { %s567_s11 = scalar_lea.hbm %s837_s2, 512 }
   0x5   :  { %p568_p0 = scmp.ne.s32.totalorder %s837_s2, %s567_s11  ;;  %p571_p1 = scmp.lt.u32.totalorder %s567_s11, %s837_s2 }
   0x7   :  { %p573_p2 = pnand %p571_p1, %p568_p0 }
   0x9   :  { %576 = shalt.err (!%p573_p2)
}
   0xa   :  { %s577_s16 = scalar_lea.vmem %s36_s28, 512  ;;  %p582_p4 = scmp.lt.s32.totalorder %s36_s28, %s36_s28 }
   0xb   :  { %p578_p3 = scmp.ne.s32.totalorder %s36_s28, %s577_s16  ;;  %p583_p5 = scmp.lt.s32.totalorder %s577_s16, %s577_s16 }
   0xd   :  { %p584_p6 = por %p583_p5, %p582_p4 }
   0xf   :  { %p585_p7 = pnand %p584_p6, %p578_p3 }
  0x11   :  { %588 = shalt.err (!%p585_p7)
}
  0x12   :  { %s663_s17 = smov 128   ;;  %s664_s18 = smov 8  }
  0x13   :  { %41 = dma.hbm_to_vmem [thread:$0]  %s837_s2, 512, %s36_s28, [#allocation6], %s663_s17, %s663_s17, %s664_s18  }
  0x14   :  { %s589_s23 = scalar_lea.hbm %s835_s0, 256 }
  0x15   :  { %p590_p8 = scmp.ne.s32.totalorder %s835_s0, %s589_s23  ;;  %p593_p9 = scmp.lt.u32.totalorder %s589_s23, %s835_s0 }
  0x17   :  { %p595_p10 = pnand %p593_p9, %p590_p8 }
  0x19   :  { %598 = shalt.err (!%p595_p10)
}
  0x1a   :  { %s599_s29 = scalar_lea.vmem %s719_s30, 256  ;;  %p604_p12 = scmp.lt.s32.totalorder %s719_s30, %s719_s30 }
  0x1b   :  { %p600_p11 = scmp.ne.s32.totalorder %s719_s30, %s599_s29  ;;  %p605_p13 = scmp.lt.s32.totalorder %s599_s29, %s599_s29 }
  0x1d   :  { %p606_p0 = por %p605_p13, %p604_p12 }
  0x1f   :  { %p607_p1 = pnand %p606_p0, %p600_p11 }
  0x21   :  { %610 = shalt.err (!%p607_p1)
}
  0x22   :  { %27 = dma.hbm_to_vmem [thread:$0]  %s835_s0, 256, %s719_s30, [#allocation3], %s663_s17, %s663_s17, %s664_s18  }
  0x23   :  { %s665_s9 = smov [#allocation7]   ;;  %s611_s13 = scalar_lea.hbm %s839_s4, 512 }
  0x24   :  { %s49_s10 = sshll.u32 %s665_s9, 4  ;;  %p612_p2 = scmp.ne.s32.totalorder %s839_s4, %s611_s13  ;;  %s50_s10 = int_to_ptr.vmem [resolvable:$true] %s49_s10 }
  0x25   :  { %p615_p3 = scmp.lt.u32.totalorder %s611_s13, %s839_s4 }
  0x27   :  { %p617_p4 = pnand %p615_p3, %p612_p2 }
  0x29   :  { %620 = shalt.err (!%p617_p4)
}
  0x2a   :  { %s621_s20 = scalar_lea.vmem %s50_s10, 512  ;;  %p626_p6 = scmp.lt.s32.totalorder %s50_s10, %s50_s10 }
  0x2b   :  { %p622_p5 = scmp.ne.s32.totalorder %s50_s10, %s621_s20  ;;  %p627_p7 = scmp.lt.s32.totalorder %s621_s20, %s621_s20 }
  0x2d   :  { %p628_p8 = por %p627_p7, %p626_p6 }
  0x2f   :  { %p629_p9 = pnand %p628_p8, %p622_p5 }
  0x31   :  { %632 = shalt.err (!%p629_p9)
}
  0x32   :  { %55 = dma.hbm_to_vmem [thread:$0]  %s839_s4, 512, %s50_s10, [#allocation6], %s663_s17, %s663_s17, %s664_s18  }
  0x33   :  { %655 = dma.done.wait [#allocation3], 256  }
  0x34   :  { %656 = vsyncadd [#allocation3], 4294967040 }
  0x35   :  { %657 = dma.done.wait [#allocation6], 1024  }
  0x36   :  { %658 = vsyncadd [#allocation6], 4294966272  ;;  %v666_v0 = vmov 0.0|0.0   ;;  %vm667_vm0 = vmmov 0   ;;  %v668_v1 = vmov 0.0   ;;  %v167_v2 = vld [vmem:[#allocation5] sm:$0xff]  ;;  %v255_v19 = vlaneseq }
  0x37   :  { %536 = vmatprep.subr.bf16.mxu1 %v666_v0  ;;  %525 = vmatprep.mubr.msk.f32.mxu1 %vm667_vm0, %v668_v1  ;;  %v168_v3 = vld [vmem:[#allocation5 + $0x8] sm:$0xff]  ;;  %v74_v4 = vld [vmem:[#allocation7] sm:$0xff]  ;;  %v169_v7 = vld [vmem:[#allocation5 + $0x10] sm:$0xff]  ;;  %vm85_vm1 = vcmask 261120   ;;  %v669_v17 = vmov 1966171168  }
  0x38   :  { %v537_v5 = vpack.c.bf16 %v168_v3, %v167_v2  ;;  %v75_v6 = vld [vmem:[#allocation7 + $0x8] sm:$0xff]  ;;  %v170_v8 = vld [vmem:[#allocation5 + $0x18] sm:$0xff]  ;;  %v76_v10 = vld [vmem:[#allocation7 + $0x10] sm:$0xff]  ;;  %v253_v18 = vunpack.c.l.s4 %v669_v17  ;;  %v780_v21 = vshrl.u32 %v255_v19, 7  ;;  %v297_v43 = vand.u32 127, %v255_v19 }
  0x39   :  { %v528_v9 = vpack.c.bf16 %v75_v6, %v74_v4  ;;  %v77_v11 = vld [vmem:[#allocation7 + $0x18] sm:$0xff]  ;;  %v540_v12 = vpack.c.bf16 %v170_v8, %v169_v7  ;;  %v71_v14 = vld [vmem:[#allocation2] sm:$0xff]  ;;  %vm306_vm2 = vcmask 1041409   ;;  %vm309_vm3 = vcmask 58368  }
  0x3a   :  { %538 = vmatpush3.bf16.msra.mxu1 %v537_v5  ;;  %v532_v13 = vpack.c.bf16 %v77_v11, %v76_v10  ;;  %514 = vmatprep.mubr.msk.f32.mxu0 %vm85_vm1, %v71_v14  ;;  %v775_v15 = vld [vmem:[%s836_s1] sm:$0x3]  ;;  %v72_v16 = vld [vmem:[#allocation2 + $0x8] sm:$0xff]  ;;  %v254_v20 = vunpack.c.0.s8 %v253_v18  ;;  %v276_v31 = vsub.s32 0, %v780_v21  ;;  %v300_v45 = vsub.s32 %v297_v43, %v780_v21 }
  0x3b   :  { %529 = vmatprep.subr.bf16.mxu0 %v528_v9  ;;  %539 = vmatprep.subr.bf16.mxu1 %v666_v0  ;;  %v491_v22 = vld [vmem:[%s838_s3] ss:$0 sm:$0xff]  ;;  %v670_v53 = vmov 0   ;;  %v320_v54 = vsub.s32 1, %v780_v21  ;;  %v393_v6 = vrot.slane %v775_v15, 1  ;;  %s671_s3 = smov 32  }
  0x3c   :  { %531 = vmatpush3.bf16.msra.mxu0 %v528_v9  ;;  %v257_v23 = vsub.s32 %v254_v20, %v780_v21  ;;  %v488_v28 = vld [vmem:[%s840_s5] ss:$0 sm:$0xff]  ;;  %556 = vset.pattern.permute.xlu0 %v670_v53  ;;  %vm378_vm4 = vcmask 523520   ;;  %s672_s5 = smov 96   ;;  %vm409_vm5 = vcmask 254976  }
  0x3d   :  { %533 = vmatprep.subr.bf16.mxu0 %v532_v13  ;;  %555 = vset.pattern.permute.xlu1 %v670_v53 }
  0x3e   :  { %541 = vmatpush3.bf16.msra.mxu1 %v540_v12 }
  0x40   :  { %535 = vmatpush3.bf16.msra.mxu0 %v532_v13 }
  0x41   :  { %526 = vmatmul.mubr.msk.f32.vlgmr.msra.gmra.mrb[0].mxu1 %vm85_vm1, %v775_v15 }
  0x43   :  { %515 = vmatmul.mubr.msk.f32.vlgmr.msra.gmra.mrb[0].mxu0 %vm85_vm1, %v72_v16 }
 0x114   :  { %v247_v24 = vpop.f32.mrb[0].mxu1 }
 0x115   :  { %v248_v25 = vadd.f32 %v491_v22, %v247_v24  ;;  %v527_v26 = vpop.f32.mrb[1].mxu1 }
 0x116   :  { %v516_v27 = vpop.f32.mrb[0].mxu0 }
 0x117   :  { %v258_v29 = vrot.slane %v248_v25, %v257_v23  ;;  %v158_v30 = vpop.f32.mrb[1].mxu0  ;;  %v164_v37 = vadd.f32 %v516_v27, %v488_v28 }
 0x118   :  { %v790_v34 = vadd.f32 %v488_v28, %v158_v30 }
 0x119   :  { %v259_v32 = vcombine.high %v258_v29, %v258_v29  ;;  %v266_v33 = vrot.slane %v258_v29, %v257_v23 }
 0x11b   :  { %v277_v35 = vrot.slane %v266_v33, %v276_v31  ;;  %v273_v36 = vrot.slane %v259_v32, %v257_v23 }
 0x11d   :  { %v284_v38 = vmul.f32 %v277_v35, %v790_v34  ;;  %v281_v39 = vrot.slane %v273_v36, %v276_v31 }
 0x11f   :  { %v286_v40 = vsel %vm85_vm1, %v284_v38, 0.0  ;;  %v285_v41 = vmul.f32 %v281_v39, %v164_v37 }
 0x120   :  { %287 = vadd.xlane.f32.xlu0 %v286_v40 }
 0x121   :  { %v289_v42 = vsel %vm85_vm1, %v285_v41, 0.0  ;;  %v493_v41 = vld [vmem:[%s841_s6] ss:$0 sm:$0xff]  ;;  %s673_s6 = smov [#allocation8]  }
 0x124   :  { %290 = vadd.xlane.f32.xlu0 %v289_v42 }
 0x1ad   :  { %v288_v44 = vpop.xlane.xlu0 %287 }
 0x1ae   :  { %v292_v46 = vmul.f32 0.17677669, %v288_v44 }
 0x1b0   :  { %v301_v49 = vrot.slane %v292_v46, %v300_v45 }
 0x1b1   :  { %v291_v47 = vpop.xlane.xlu0 %290 }
 0x1b2   :  { %v293_v48 = vmul.f32 0.17677669, %v291_v47 }
 0x1b4   :  { %v305_v50 = vrot.slane %v293_v48, %v300_v45 }
 0x1b6   :  { %v307_v51 = vsel %vm306_vm2, %v305_v50, %v301_v49 }
 0x1b7   :  { %v310_v52 = vsel %vm309_vm3, %v307_v51, -inf }
 0x1b8   :  { %311 = vmax.xlane.f32.xlu1 %v310_v52  ;;  %v494_v52 = vld [vmem:[%s842_s7] ss:$0 sm:$0xff]  ;;  %s478_s7 = sshll.u32 %s673_s6, 4  ;;  %s479_s7 = int_to_ptr.vmem [resolvable:$true] %s478_s7 }
 0x1b9   :  { %s633_s27 = scalar_lea.vmem %s479_s7, 32  ;;  %p638_p11 = scmp.lt.s32.totalorder %s479_s7, %s479_s7 }
 0x1ba   :  { %p634_p10 = scmp.ne.s32.totalorder %s479_s7, %s633_s27  ;;  %p639_p12 = scmp.lt.s32.totalorder %s633_s27, %s633_s27 }
 0x1bc   :  { %p640_p13 = por %p639_p12, %p638_p11 }
 0x1be   :  { %p641_p0 = pnand %p640_p13, %p634_p10 }
 0x245   :  { %v312_v55 = vpop.xlane.xlu1 %311 }
 0x246   :  { %v317_v56 = vrot.slane %v312_v55, %v276_v31  ;;  %v321_v57 = vrot.slane %v312_v55, %v320_v54 }
 0x248   :  { %v324_v58 = vsub.f32 %v292_v46, %v317_v56  ;;  %v325_v59 = vsub.f32 %v293_v48, %v321_v57 }
 0x24a   :  { %v326_v60 = vmul.f32 1.442695, %v324_v58  ;;  %v328_v61 = vmul.f32 1.442695, %v325_v59 }
 0x24c   :  { %557 = vpow2.f32 %v326_v60 }
 0x24d   :  { %559 = vpow2.f32 %v328_v61 }
 0x256   :  { %v558_v62 = vpop.eup %557 }
 0x257   :  { %v560_v63 = vpop.eup %559  ;;  %333 = vperm.xlu1 %555, %v558_v62  }
 0x258   :  { %336 = vperm.xlu0 %556, %v560_v63  }
 0x2d6   :  { %v334_v0 = vpop.permute.xlu1 %333 }
 0x2d7   :  { %v337_v1 = vpop.permute.xlu0 %336  ;;  %v341_v2 = vrot.slane %v334_v0, %v300_v45 }
 0x2d8   :  { %v345_v3 = vrot.slane %v337_v1, %v300_v45 }
 0x2da   :  { %v346_v4 = vsel %vm306_vm2, %v345_v3, %v341_v2 }
 0x2db   :  { %v348_v5 = vsel %vm309_vm3, %v346_v4, 0.0 }
 0x2dc   :  { %349 = vadd.xlane.f32.xlu1 %v348_v5 }
 0x2ed   :  { %396 = vrot.lane.b32.xlu1 %v393_v6, %s671_s3 }
 0x369   :  { %v350_v7 = vpop.xlane.xlu1 %349 }
 0x36a   :  { %v359_v8 = vrot.slane %v350_v7, %v320_v54  ;;  %v355_v9 = vrot.slane %v350_v7, %v276_v31 }
 0x36c   :  { %561 = vrcp.f32 %v359_v8 }
 0x36d   :  { %563 = vrcp.f32 %v355_v9  ;;  %v397_v29 = vpop.permute.xlu1 %396 }
 0x376   :  { %v562_v10 = vpop.eup %561 }
 0x377   :  { %v365_v11 = vmul.f32 %v562_v10, %v560_v63  ;;  %v564_v12 = vpop.eup %563 }
 0x378   :  { %v363_v13 = vmul.f32 %v564_v12, %v558_v62 }
 0x379   :  { %373 = vperm.xlu0 %556, %v365_v11  }
 0x37d   :  { %368 = vperm.xlu0 %556, %v363_v13  }
 0x381   :  { %394 = vrot.lane.b32.xlu0 %v775_v15, %s671_s3 }
 0x3f8   :  { %v374_v14 = vpop.permute.xlu0 %373 }
 0x3f9   :  { %v377_v16 = vmul.f32 %v374_v14, %v164_v37 }
 0x3fb   :  { %v386_v17 = vsel %vm378_vm4, %v377_v16, 0.0 }
 0x3fc   :  { %v387_v18 = vrot.slane %v386_v17, 4  ;;  %v369_v19 = vpop.permute.xlu0 %368 }
 0x3fd   :  { %v376_v20 = vmul.f32 %v369_v19, %v790_v34 }
 0x3fe   :  { %v388_v21 = vadd.f32 %v387_v18, %v386_v17 }
 0x3ff   :  { %v379_v22 = vsel %vm378_vm4, %v376_v20, 0.0 }
 0x400   :  { %v389_v23 = vrot.slane %v388_v21, 2  ;;  %v380_v24 = vrot.slane %v379_v22, 4  ;;  %v395_v33 = vpop.permute.xlu0 %394 }
 0x402   :  { %v381_v25 = vadd.f32 %v380_v24, %v379_v22  ;;  %v390_v26 = vadd.f32 %v389_v23, %v388_v21 }
 0x404   :  { %v382_v27 = vrot.slane %v381_v25, 2  ;;  %v391_v28 = vrot.slane %v390_v26, 1 }
 0x406   :  { %v392_v30 = vadd.f32 %v391_v28, %v390_v26  ;;  %v383_v31 = vadd.f32 %v382_v27, %v381_v25 }
 0x408   :  { %v401_v15 = vadd.f32 %v397_v29, %v392_v30  ;;  %v384_v32 = vrot.slane %v383_v31, 1 }
 0x40a   :  { %v385_v35 = vadd.f32 %v384_v32, %v383_v31  ;;  %v404_v36 = vrot.slane %v401_v15, 7 }
 0x40c   :  { %v400_v37 = vadd.f32 %v395_v33, %v385_v35 }
 0x40e   :  { %v405_v38 = vsel %vm306_vm2, %v404_v36, %v400_v37 }
 0x40f   :  { %406 = vrot.lane.b32.xlu0 %v405_v38, %s672_s5 }
 0x481   :  { %v407_v34 = vpop.permute.xlu0 %406 }
 0x482   :  { %v410_v39 = vsel %vm409_vm5, %v407_v34, 0.0 }
 0x483   :  { %411 = vadd.xlane.f32.xlu0 %v410_v39 }
 0x499   :  { %448 = vrot.lane.b32.xlu0 %v493_v41, %s671_s3 }
 0x510   :  { %v412_v40 = vpop.xlane.xlu0 %411 }
 0x511   :  { %v414_v42 = vmul.f32 0.03125, %v412_v40 }
 0x513   :  { %v416_v43 = vrot.slane %v414_v42, 1  ;;  %v419_v44 = vsub.f32 %v400_v37, %v414_v42 }
 0x514   :  { %v449_v59 = vpop.permute.xlu0 %448 }
 0x515   :  { %v420_v45 = vsub.f32 %v401_v15, %v416_v43  ;;  %v421_v47 = vmul.f32 %v419_v44, %v419_v44 }
 0x517   :  { %v422_v46 = vmul.f32 %v420_v45, %v420_v45 }
 0x519   :  { %v425_v48 = vrot.slane %v422_v46, 7 }
 0x51b   :  { %v426_v49 = vsel %vm306_vm2, %v425_v48, %v421_v47 }
 0x51c   :  { %427 = vrot.lane.b32.xlu1 %v426_v49, %s672_s5 }
 0x58e   :  { %v428_v50 = vpop.permute.xlu1 %427 }
 0x58f   :  { %v430_v51 = vsel %vm409_vm5, %v428_v50, 0.0 }
 0x590   :  { %431 = vadd.xlane.f32.xlu1 %v430_v51 }
 0x5a1   :  { %459 = vrot.lane.b32.xlu1 %v494_v52, %s671_s3 }
 0x61d   :  { %v432_v53 = vpop.xlane.xlu1 %431 }
 0x61e   :  { %v433_v54 = vmul.f32 0.03125, %v432_v53 }
 0x620   :  { %v434_v55 = vadd.f32 1e-05, %v433_v54 }
 0x621   :  { %v460_v63 = vpop.permute.xlu1 %459 }
 0x622   :  { %565 = vrsqrt.f32 %v434_v55 }
 0x62c   :  { %v566_v56 = vpop.eup %565 }
 0x62d   :  { %v437_v57 = vrot.slane %v566_v56, 1  ;;  %v440_v58 = vmul.f32 %v566_v56, %v419_v44 }
 0x62f   :  { %v441_v60 = vmul.f32 %v437_v57, %v420_v45  ;;  %v451_v61 = vmul.f32 %v449_v59, %v440_v58 }
 0x631   :  { %v452_v62 = vmul.f32 %v449_v59, %v441_v60  ;;  %v462_v1 = vadd.f32 %v460_v63, %v451_v61 }
 0x633   :  { %v463_v0 = vadd.f32 %v460_v63, %v452_v62 }
 0x635   :  { %v466_v2 = vrot.slane %v463_v0, 7 }
 0x637   :  { %v467_v3 = vsel %vm306_vm2, %v466_v2, %v462_v1 }
 0x638   :  { %468 = vrot.lane.b32.xlu0 %v467_v3, %s672_s5 }
 0x6aa   :  { %v469_v4 = vpop.permute.xlu0 %468 }
 0x6ab   :  { %471 = vst.msk [vmem:[#allocation8] sm:$0x3] %vm409_vm5, %v469_v4 }
 0x6ac   :  { %644 = shalt.err (!%p641_p0)
}
 0x6ad   :  { %s645_s28 = scalar_lea.hbm %s843_s8, 32 }
 0x6ae   :  { %p646_p1 = scmp.ne.s32.totalorder %s843_s8, %s645_s28  ;;  %p649_p2 = scmp.lt.u32.totalorder %s645_s28, %s843_s8 }
 0x6b0   :  { %p651_p3 = pnand %p649_p2, %p646_p1 }
 0x6b2   :  { %654 = shalt.err (!%p651_p3)
}
 0x6b3   :  { %481 = dma.vmem_to_hbm [thread:$0]  %s479_s7, 32, %s843_s8, [#allocation4]  }
 0x6b4   :  { %659 = dma.done.wait [#allocation4], 32  }
 0x6b5   :  { %660 = vsyncadd [#allocation4], 4294967264 }
 0x6b6   :  { %485 = vsyncpa [#allocation3], 1 }
 0x6b7   :  { %486 = vsyncpa [#allocation6], 1 }
 0x6b8   :  { %487 = vsyncpa [#allocation4], 1 }

</bundles_post_ra>
